<compile_context>
chip_gen: v7x
topology: tpu7x:2x2x1
jax: 0.10.0
libtpu: 0.0.40
codegen_flags: <defaults>
</compile_context>

<pallas_src>
import functools

import jax
import jax.numpy as jnp
import numpy as np
from jax.experimental import pallas as pl
from jax.experimental.pallas import tpu as pltpu

LANE = 128


# ----------------------------------------------------------------------------
# Fused kernel: one grid axis over batch tiles; weights VMEM-resident.
# ----------------------------------------------------------------------------
def policy_fused_kernel(x_ref, w1_ref, b1_ref, w2_ref, b2_ref, wh_ref, bh_ref,
                        h_ref, head_ref):
    x = x_ref[...]

    # Fused layer 1 (actor | critic): [Bt, OBS] @ [OBS, 2H] -> [Bt, 2H]
    h1 = jnp.tanh(
        jnp.dot(x, w1_ref[...], preferred_element_type=jnp.float32) + b1_ref[...]
    )

    # Fused layer 2 (block-diagonal Wa2 (+) Wc2): [Bt, 2H] @ [2H, 2H]
    h2 = jnp.tanh(
        jnp.dot(h1, w2_ref[...], preferred_element_type=jnp.float32) + b2_ref[...]
    )
    h_ref[...] = h2  # [ha | hc], lane-dense 2H = 128 wide

    # Fused heads (Categorical logits + critic_linear value) in one lane-dense
    # [Bt, 128] output slab.
    head_ref[...] = (
        jnp.dot(h2, wh_ref[...], preferred_element_type=jnp.float32) + bh_ref[...]
    )


def policy_forward(x, fused, *, num_actions, batch_tile=256):
    """Run the fused Policy base + heads Pallas kernel.

    x: [B, obs_dim] float32
    fused: dict of pre-concatenated weights (see pack_params).
    Returns (value [B,1], actor_features [B,H], dist_logits [B,A]).
    """
    B, OBS = x.shape
    H2 = fused["w1"].shape[1]        # 2 * hidden
    HEAD_W = fused["wh"].shape[1]    # padded head width (multiple of 128)
    H = H2 // 2
    A = num_actions

    # Batch tiling: single block for small B; tile + pad for large rollouts.
    if B <= batch_tile:
        bt, Bp = B, B
    else:
        bt = max(8, (batch_tile // 8) * 8)
        Bp = ((B + bt - 1) // bt) * bt
    xp = jnp.pad(x, ((0, Bp - B), (0, 0))) if Bp != B else x
    grid = (Bp // bt,)

    flops = 2 * Bp * (OBS * H2 + H2 * H2 + H2 * HEAD_W)
    transcendentals = 2 * Bp * H2  # two tanh layers over [Bp, 2H]
    bytes_accessed = 4 * (
        Bp * OBS + OBS * H2 + H2 + H2 * H2 + H2 + H2 * HEAD_W + HEAD_W
        + Bp * H2 + Bp * HEAD_W
    )

    def const_spec(shape):
        # Weights/biases: same block for every grid step -> stay VMEM-resident.
        return pl.BlockSpec(shape, lambda i: (0, 0))

    h2_out, head_out = pl.pallas_call(
        policy_fused_kernel,
        out_shape=(
            jax.ShapeDtypeStruct((Bp, H2), jnp.float32),
            jax.ShapeDtypeStruct((Bp, HEAD_W), jnp.float32),
        ),
        grid_spec=pltpu.PrefetchScalarGridSpec(
            num_scalar_prefetch=0,
            grid=grid,
            in_specs=[
                pl.BlockSpec((bt, OBS), lambda i: (i, 0)),   # x batch tile
                const_spec((OBS, H2)),                        # W1  = [Wa1 | Wc1]
                const_spec((1, H2)),                          # b1
                const_spec((H2, H2)),                         # W2  = Wa2 (+) Wc2
                const_spec((1, H2)),                          # b2
                const_spec((H2, HEAD_W)),                     # Whead (logits|value)
                const_spec((1, HEAD_W)),                      # bhead
            ],
            out_specs=[
                pl.BlockSpec((bt, H2), lambda i: (i, 0)),      # [ha | hc]
                pl.BlockSpec((bt, HEAD_W), lambda i: (i, 0)),  # head slab
            ],
        ),
        compiler_params=pltpu.CompilerParams(
            dimension_semantics=("parallel",),
        ),
        cost_estimate=pl.CostEstimate(
            flops=flops,
            transcendentals=transcendentals,
            bytes_accessed=bytes_accessed,
        ),
    )(xp, fused["w1"], fused["b1"], fused["w2"], fused["b2"],
      fused["wh"], fused["bh"])

    actor_features = h2_out[:B, :H]
    logits = head_out[:B, :A]
    value = head_out[:B, A:A + 1]
    return value, actor_features, logits


# ----------------------------------------------------------------------------
# Deterministic parameter init (mirrors the module's init scheme:
# orthogonal weights with the appropriate gain, zero biases).
# ----------------------------------------------------------------------------
def orthogonal(key, out_dim, in_dim, gain):
    # orthogonal init on a [out, in] matrix (PyTorch convention), then
    # transpose to [in, out] for the kernel's y = x @ W layout.
    a = jax.random.normal(key, (max(out_dim, in_dim), min(out_dim, in_dim)),
                          dtype=jnp.float32)
    q, r = jnp.linalg.qr(a)
    q = q * jnp.sign(jnp.diag(r))[None, :]
    w = q[:out_dim, :in_dim] if out_dim >= in_dim else q[:in_dim, :out_dim].T
    return (gain * w).T.astype(jnp.float32)  # -> [in, out]


def init_params(obs_dim, hidden, action_n, seed=0):
    keys = jax.random.split(jax.random.PRNGKey(seed), 7)
    g = np.sqrt(2.0).astype(np.float32)  # gain for actor/critic hidden layers
    return {
        "wa1": orthogonal(keys[0], hidden, obs_dim, g),
        "ba1": jnp.zeros((1, hidden), jnp.float32),
        "wa2": orthogonal(keys[1], hidden, hidden, g),
        "ba2": jnp.zeros((1, hidden), jnp.float32),
        "wc1": orthogonal(keys[2], hidden, obs_dim, g),
        "bc1": jnp.zeros((1, hidden), jnp.float32),
        "wc2": orthogonal(keys[3], hidden, hidden, g),
        "bc2": jnp.zeros((1, hidden), jnp.float32),
        "wv": orthogonal(keys[4], 1, hidden, 1.0),          # critic_linear
        "bv": jnp.zeros((1, 1), jnp.float32),
        "wd": orthogonal(keys[5], action_n, hidden, 0.01),  # Categorical linear
        "bd": jnp.zeros((1, action_n), jnp.float32),
    }


def pack_params(p, num_actions):
    """One-time, init-time concatenation of the 13 per-layer tensors into the
    7 fused operands consumed by the kernel."""
    H = p["wa2"].shape[1]
    A = num_actions
    head_w = max(LANE, ((A + 1 + LANE - 1) // LANE) * LANE)

    w1 = jnp.concatenate([p["wa1"], p["wc1"]], axis=1)          # [OBS, 2H]
    b1 = jnp.concatenate([p["ba1"], p["bc1"]], axis=1)          # [1, 2H]

    w2 = jnp.zeros((2 * H, 2 * H), jnp.float32)                 # block-diag
    w2 = w2.at[:H, :H].set(p["wa2"]).at[H:, H:].set(p["wc2"])
    b2 = jnp.concatenate([p["ba2"], p["bc2"]], axis=1)          # [1, 2H]

    wh = jnp.zeros((2 * H, head_w), jnp.float32)                # heads
    wh = wh.at[:H, :A].set(p["wd"])          # logits from ha
    wh = wh.at[H:, A:A + 1].set(p["wv"])     # value  from hc
    bh = jnp.zeros((1, head_w), jnp.float32)
    bh = bh.at[:, :A].set(p["bd"]).at[:, A:A + 1].set(p["bv"])

    return {"w1": w1, "b1": b1, "w2": w2, "b2": b2, "wh": wh, "bh": bh}


def reference_forward(x, p):
    ha = jnp.tanh(jnp.tanh(x @ p["wa1"] + p["ba1"]) @ p["wa2"] + p["ba2"])
    hc = jnp.tanh(jnp.tanh(x @ p["wc1"] + p["bc1"]) @ p["wc2"] + p["bc2"])
    return hc @ p["wv"] + p["bv"], ha, ha @ p["wd"] + p["bd"]


if __name__ == "__main__":
    B, OBS, HIDDEN, ACTIONS = 8, 32, 64, 4

    key = jax.random.PRNGKey(0)
    k_x, k_a = jax.random.split(key)
    inputs = jax.random.normal(k_x, (B, OBS), dtype=jnp.float32)

    # Non-recurrent: rnn_hxs has size 1, masks / last_actions are unused by the
    # base forward but kept for interface fidelity (passed through unchanged).
    rnn_hxs = jnp.zeros((B, 1), jnp.float32)
    masks = jnp.ones((B, 1), jnp.float32)
    last_actions = jax.nn.one_hot(
        jax.random.randint(k_a, (B,), 0, ACTIONS), ACTIONS, dtype=jnp.float32
    )
    # TODO(synk): recurrent GRU branch (_forward_gru) not exercised since
    # recurrent=False (module default); dist.sample() is stochastic and left out.

    params = init_params(OBS, HIDDEN, ACTIONS, seed=0)
    fused = pack_params(params, ACTIONS)

    run = jax.jit(functools.partial(policy_forward, num_actions=ACTIONS))
    value, actor_features, logits = run(inputs, fused)
    jax.block_until_ready((value, actor_features, logits))

    # correctness check against a pure-JAX reference built from the UNFUSED params
    v_ref, a_ref, l_ref = reference_forward(inputs, params)
    np.testing.assert_allclose(np.asarray(value), np.asarray(v_ref), atol=1e-5, rtol=1e-5)
    np.testing.assert_allclose(np.asarray(actor_features), np.asarray(a_ref), atol=1e-5, rtol=1e-5)
    np.testing.assert_allclose(np.asarray(logits), np.asarray(l_ref), atol=1e-5, rtol=1e-5)

    assert value.shape == (B, 1)
    assert actor_features.shape == (B, HIDDEN)
    assert logits.shape == (B, ACTIONS)
    assert rnn_hxs.shape == (B, 1)  # pass-through, non-recurrent

    print("KERNEL_OK")
</pallas_src>

<mosaic_0001>
module attributes {stable_mosaic.version = 11 : i64} {
  func.func @policy_fused_kernel(%arg0: i32, %arg1: memref<8x32xf32, #tpu.memory_space<vmem>>, %arg2: memref<32x128xf32, #tpu.memory_space<vmem>>, %arg3: memref<1x128xf32, #tpu.memory_space<vmem>>, %arg4: memref<128x128xf32, #tpu.memory_space<vmem>>, %arg5: memref<1x128xf32, #tpu.memory_space<vmem>>, %arg6: memref<128x128xf32, #tpu.memory_space<vmem>>, %arg7: memref<1x128xf32, #tpu.memory_space<vmem>>, %arg8: memref<8x128xf32, #tpu.memory_space<vmem>>, %arg9: memref<8x128xf32, #tpu.memory_space<vmem>>) attributes {dimension_semantics = [#tpu.dimension_semantics<parallel>], iteration_bounds = array<i64: 1>, scalar_prefetch = 0 : i64, scratch_operands = 0 : i64, tpu.core_type = #tpu.core_type<tc>, window_params = [{transform_indices = @transform_0, window_bounds = array<i64: 8, 32>}, {pipeline_mode = #tpu.pipeline_mode<synchronous>, transform_indices = @transform_1, window_bounds = array<i64: 32, 128>}, {pipeline_mode = #tpu.pipeline_mode<synchronous>, transform_indices = @transform_2, window_bounds = array<i64: 1, 128>}, {pipeline_mode = #tpu.pipeline_mode<synchronous>, transform_indices = @transform_3, window_bounds = array<i64: 128, 128>}, {pipeline_mode = #tpu.pipeline_mode<synchronous>, transform_indices = @transform_4, window_bounds = array<i64: 1, 128>}, {pipeline_mode = #tpu.pipeline_mode<synchronous>, transform_indices = @transform_5, window_bounds = array<i64: 128, 128>}, {pipeline_mode = #tpu.pipeline_mode<synchronous>, transform_indices = @transform_6, window_bounds = array<i64: 1, 128>}, {transform_indices = @transform_7, window_bounds = array<i64: 8, 128>}, {transform_indices = @transform_8, window_bounds = array<i64: 8, 128>}]} {
    %c0 = arith.constant 0 : index
    %c0_0 = arith.constant 0 : index
    %0 = vector.load %arg1[%c0, %c0_0] : memref<8x32xf32, #tpu.memory_space<vmem>>, vector<8x32xf32>
    %c0_1 = arith.constant 0 : index
    %c0_2 = arith.constant 0 : index
    %1 = vector.load %arg2[%c0_1, %c0_2] : memref<32x128xf32, #tpu.memory_space<vmem>>, vector<32x128xf32>
    %cst = arith.constant dense<0.000000e+00> : vector<8x128xf32>
    %2 = tpu.matmul %0, %1, %cst {dimension_numbers = #tpu.dot_dimension_numbers<[1], [0], [0], [1], [0, 0, 1, 1], [], []>} : vector<8x32xf32>, vector<32x128xf32>, vector<8x128xf32> -> vector<8x128xf32>
    %c0_3 = arith.constant 0 : index
    %c0_4 = arith.constant 0 : index
    %3 = vector.load %arg3[%c0_3, %c0_4] : memref<1x128xf32, #tpu.memory_space<vmem>>, vector<1x128xf32>
    %4 = vector.broadcast %3 : vector<1x128xf32> to vector<8x128xf32>
    %5 = arith.addf %2, %4 : vector<8x128xf32>
    %6 = math.tanh %5 : vector<8x128xf32>
    %c0_5 = arith.constant 0 : index
    %c0_6 = arith.constant 0 : index
    %7 = vector.load %arg4[%c0_5, %c0_6] : memref<128x128xf32, #tpu.memory_space<vmem>>, vector<128x128xf32>
    %cst_7 = arith.constant dense<0.000000e+00> : vector<8x128xf32>
    %8 = tpu.matmul %6, %7, %cst_7 {dimension_numbers = #tpu.dot_dimension_numbers<[1], [0], [0], [1], [0, 0, 1, 1], [], []>} : vector<8x128xf32>, vector<128x128xf32>, vector<8x128xf32> -> vector<8x128xf32>
    %c0_8 = arith.constant 0 : index
    %c0_9 = arith.constant 0 : index
    %9 = vector.load %arg5[%c0_8, %c0_9] : memref<1x128xf32, #tpu.memory_space<vmem>>, vector<1x128xf32>
    %10 = vector.broadcast %9 : vector<1x128xf32> to vector<8x128xf32>
    %11 = arith.addf %8, %10 : vector<8x128xf32>
    %12 = math.tanh %11 : vector<8x128xf32>
    %c0_10 = arith.constant 0 : index
    %c0_11 = arith.constant 0 : index
    %13 = vector.load %arg8[%c0_10, %c0_11] : memref<8x128xf32, #tpu.memory_space<vmem>>, vector<8x128xf32>
    tpu.vector_store %arg8[%c0_10, %c0_11], %12 {strides = array<i32>} : memref<8x128xf32, #tpu.memory_space<vmem>>, vector<8x128xf32>,
    %c0_12 = arith.constant 0 : index
    %c0_13 = arith.constant 0 : index
    %14 = vector.load %arg6[%c0_12, %c0_13] : memref<128x128xf32, #tpu.memory_space<vmem>>, vector<128x128xf32>
    %cst_14 = arith.constant dense<0.000000e+00> : vector<8x128xf32>
    %15 = tpu.matmul %12, %14, %cst_14 {dimension_numbers = #tpu.dot_dimension_numbers<[1], [0], [0], [1], [0, 0, 1, 1], [], []>} : vector<8x128xf32>, vector<128x128xf32>, vector<8x128xf32> -> vector<8x128xf32>
    %c0_15 = arith.constant 0 : index
    %c0_16 = arith.constant 0 : index
    %16 = vector.load %arg7[%c0_15, %c0_16] : memref<1x128xf32, #tpu.memory_space<vmem>>, vector<1x128xf32>
    %17 = vector.broadcast %16 : vector<1x128xf32> to vector<8x128xf32>
    %18 = arith.addf %15, %17 : vector<8x128xf32>
    %c0_17 = arith.constant 0 : index
    %c0_18 = arith.constant 0 : index
    %19 = vector.load %arg9[%c0_17, %c0_18] : memref<8x128xf32, #tpu.memory_space<vmem>>, vector<8x128xf32>
    tpu.vector_store %arg9[%c0_17, %c0_18], %18 {strides = array<i32>} : memref<8x128xf32, #tpu.memory_space<vmem>>, vector<8x128xf32>,
    return
  }
  func.func @transform_0(%arg0: i32) -> (i32, i32) {
    %c0_i32 = arith.constant 0 : i32
    %c0_i32_0 = arith.constant 0 : i32
    return %arg0, %c0_i32 : i32, i32
  }
  func.func @transform_1(%arg0: i32) -> (i32, i32) {
    %c0_i32 = arith.constant 0 : i32
    %c0_i32_0 = arith.constant 0 : i32
    %c0_i32_1 = arith.constant 0 : i32
    return %c0_i32, %c0_i32_0 : i32, i32
  }
  func.func @transform_2(%arg0: i32) -> (i32, i32) {
    %c0_i32 = arith.constant 0 : i32
    %c0_i32_0 = arith.constant 0 : i32
    %c0_i32_1 = arith.constant 0 : i32
    return %c0_i32, %c0_i32_0 : i32, i32
  }
  func.func @transform_3(%arg0: i32) -> (i32, i32) {
    %c0_i32 = arith.constant 0 : i32
    %c0_i32_0 = arith.constant 0 : i32
    %c0_i32_1 = arith.constant 0 : i32
    return %c0_i32, %c0_i32_0 : i32, i32
  }
  func.func @transform_4(%arg0: i32) -> (i32, i32) {
    %c0_i32 = arith.constant 0 : i32
    %c0_i32_0 = arith.constant 0 : i32
    %c0_i32_1 = arith.constant 0 : i32
    return %c0_i32, %c0_i32_0 : i32, i32
  }
  func.func @transform_5(%arg0: i32) -> (i32, i32) {
    %c0_i32 = arith.constant 0 : i32
    %c0_i32_0 = arith.constant 0 : i32
    %c0_i32_1 = arith.constant 0 : i32
    return %c0_i32, %c0_i32_0 : i32, i32
  }
  func.func @transform_6(%arg0: i32) -> (i32, i32) {
    %c0_i32 = arith.constant 0 : i32
    %c0_i32_0 = arith.constant 0 : i32
    %c0_i32_1 = arith.constant 0 : i32
    return %c0_i32, %c0_i32_0 : i32, i32
  }
  func.func @transform_7(%arg0: i32) -> (i32, i32) {
    %c0_i32 = arith.constant 0 : i32
    %c0_i32_0 = arith.constant 0 : i32
    return %arg0, %c0_i32 : i32, i32
  }
  func.func @transform_8(%arg0: i32) -> (i32, i32) {
    %c0_i32 = arith.constant 0 : i32
    %c0_i32_0 = arith.constant 0 : i32
    return %arg0, %c0_i32 : i32, i32
  }
}

</mosaic_0001>

<bundles_post_ra>
// kernel: policy_forward.1
= control target key start
LH: loop header
LB: loop body
LE: loop exit
PB: predicated region body
PF: predicated region fallthrough
CT: control target
= control target key end

     0   :  { %14 = vsyncpa [#allocation3], 0  ;;  %s846_s0 = inlined_call_operand.hbm [shape: f32[8,32], index: 0, kind: input, shape index: {}]   ;;  %s847_s1 = inlined_call_operand.hbm [shape: f32[32,128], index: 1, kind: input, shape index: {}]   ;;  %s848_s2 = inlined_call_operand.vmem [shape: f32[1,128], index: 2, kind: input, shape index: {}]   ;;  %s849_s3 = inlined_call_operand.hbm [shape: f32[128,128], index: 3, kind: input, shape index: {}]   ;;  %s850_s4 = inlined_call_operand.vmem [shape: f32[1,128], index: 4, kind: input, shape index: {}]   ;;  %s851_s5 = inlined_call_operand.hbm [shape: f32[128,128], index: 5, kind: input, shape index: {}]   ;;  %s852_s6 = inlined_call_operand.vmem [shape: f32[1,128], index: 6, kind: input, shape index: {}]   ;;  %s853_s7 = inlined_call_operand.hbm [shape: f32[8,128], index: 7, kind: output, shape index: {0}]   ;;  %s854_s8 = inlined_call_operand.vmem [shape: f32[8,128], index: 8, kind: output, shape index: {1}]  }
   0x1   :  { %15 = vsyncpa [#allocation6], 0 }
   0x2   :  { %16 = vsyncpa [#allocation9], 0 }
   0x3   :  { %17 = vsyncpa [#allocation4], 0  ;;  %s689_s27 = smov [#allocation5]   ;;  %s571_s9 = scalar_lea.hbm %s847_s1, 512 }
   0x4   :  { %s33_s28 = sshll.u32 %s689_s27, 4  ;;  %p572_p0 = scmp.ne.s32.totalorder %s847_s1, %s571_s9  ;;  %s34_s28 = int_to_ptr.vmem [resolvable:$true] %s33_s28 }
   0x5   :  { %p575_p1 = scmp.lt.u32.totalorder %s571_s9, %s847_s1 }
   0x7   :  { %p577_p2 = pnand %p575_p1, %p572_p0 }
   0x9   :  { %580 = shalt.err (!%p577_p2)
}
   0xa   :  { %s581_s14 = scalar_lea.vmem %s34_s28, 512  ;;  %p586_p4 = scmp.lt.s32.totalorder %s34_s28, %s34_s28 }
   0xb   :  { %p582_p3 = scmp.ne.s32.totalorder %s34_s28, %s581_s14  ;;  %p587_p5 = scmp.lt.s32.totalorder %s581_s14, %s581_s14 }
   0xd   :  { %p588_p6 = por %p587_p5, %p586_p4 }
   0xf   :  { %p589_p7 = pnand %p588_p6, %p582_p3 }
  0x11   :  { %592 = shalt.err (!%p589_p7)
}
  0x12   :  { %s690_s15 = smov 128   ;;  %s691_s16 = smov 8  }
  0x13   :  { %39 = dma.hbm_to_vmem [thread:$0]  %s847_s1, 512, %s34_s28, [#allocation6], %s690_s15, %s690_s15, %s691_s16  }
  0x14   :  { %s692_s19 = smov [#allocation2]   ;;  %s693_s21 = smov [#allocation7]  }
  0x15   :  { %s24_s20 = sshll.u32 %s692_s19, 4  ;;  %s47_s22 = sshll.u32 %s693_s21, 4  ;;  %s25_s20 = int_to_ptr.vmem [resolvable:$true] %s24_s20  ;;  %s48_s22 = int_to_ptr.vmem [resolvable:$true] %s47_s22 }
  0x16   :  { %s593_s25 = scalar_lea.hbm %s846_s0, 128 }
  0x17   :  { %p594_p8 = scmp.ne.s32.totalorder %s846_s0, %s593_s25  ;;  %p597_p9 = scmp.lt.u32.totalorder %s593_s25, %s846_s0 }
  0x19   :  { %p599_p10 = pnand %p597_p9, %p594_p8 }
  0x1b   :  { %602 = shalt.err (!%p599_p10)
}
  0x1c   :  { %s603_s1 = scalar_lea.vmem %s25_s20, 128  ;;  %p608_p12 = scmp.lt.s32.totalorder %s25_s20, %s25_s20 }
  0x1d   :  { %p604_p11 = scmp.ne.s32.totalorder %s25_s20, %s603_s1  ;;  %p609_p13 = scmp.lt.s32.totalorder %s603_s1, %s603_s1 }
  0x1f   :  { %p610_p0 = por %p609_p13, %p608_p12 }
  0x21   :  { %p611_p1 = pnand %p610_p0, %p604_p11 }
  0x23   :  { %614 = shalt.err (!%p611_p1)
}
  0x24   :  { %27 = dma.hbm_to_vmem [thread:$0]  %s846_s0, 128, %s25_s20, [#allocation3]  }
  0x25   :  { %s615_s12 = scalar_lea.hbm %s849_s3, 2048 }
  0x26   :  { %p616_p2 = scmp.ne.s32.totalorder %s849_s3, %s615_s12  ;;  %p619_p3 = scmp.lt.u32.totalorder %s615_s12, %s849_s3 }
  0x28   :  { %p621_p4 = pnand %p619_p3, %p616_p2 }
  0x2a   :  { %624 = shalt.err (!%p621_p4)
}
  0x2b   :  { %s625_s19 = scalar_lea.vmem %s48_s22, 2048  ;;  %p630_p6 = scmp.lt.s32.totalorder %s48_s22, %s48_s22 }
  0x2c   :  { %p626_p5 = scmp.ne.s32.totalorder %s48_s22, %s625_s19  ;;  %p631_p7 = scmp.lt.s32.totalorder %s625_s19, %s625_s19 }
  0x2e   :  { %p632_p8 = por %p631_p7, %p630_p6 }
  0x30   :  { %p633_p9 = pnand %p632_p8, %p626_p5 }
  0x32   :  { %636 = shalt.err (!%p633_p9)
}
  0x33   :  { %53 = dma.hbm_to_vmem [thread:$0]  %s849_s3, 2048, %s48_s22, [#allocation6], %s690_s15, %s690_s15, %s691_s16  }
  0x34   :  { %s694_s21 = smov [#allocation8]   ;;  %s637_s26 = scalar_lea.hbm %s851_s5, 2048 }
  0x35   :  { %s61_s23 = sshll.u32 %s694_s21, 4  ;;  %p638_p10 = scmp.ne.s32.totalorder %s851_s5, %s637_s26  ;;  %s62_s23 = int_to_ptr.vmem [resolvable:$true] %s61_s23 }
  0x36   :  { %p641_p11 = scmp.lt.u32.totalorder %s637_s26, %s851_s5 }
  0x38   :  { %p643_p12 = pnand %p641_p11, %p638_p10 }
  0x3a   :  { %646 = shalt.err (!%p643_p12)
}
  0x3b   :  { %s647_s28 = scalar_lea.vmem %s62_s23, 2048  ;;  %p652_p0 = scmp.lt.s32.totalorder %s62_s23, %s62_s23 }
  0x3c   :  { %p648_p13 = scmp.ne.s32.totalorder %s62_s23, %s647_s28  ;;  %p653_p1 = scmp.lt.s32.totalorder %s647_s28, %s647_s28 }
  0x3e   :  { %p654_p2 = por %p653_p1, %p652_p0 }
  0x40   :  { %p655_p3 = pnand %p654_p2, %p648_p13 }
  0x42   :  { %658 = shalt.err (!%p655_p3)
}
  0x43   :  { %67 = dma.hbm_to_vmem [thread:$0]  %s851_s5, 2048, %s62_s23, [#allocation9], %s690_s15, %s690_s15, %s691_s16  }
  0x44   :  { %681 = dma.done.wait [#allocation3], 128  }
  0x45   :  { %682 = vsyncadd [#allocation3], 4294967168 }
  0x46   :  { %683 = dma.done.wait [#allocation6], 2560  }
  0x47   :  { %684 = vsyncadd [#allocation6], 4294964736 }
  0x48   :  { %685 = dma.done.wait [#allocation9], 2048  }
  0x49   :  { %686 = vsyncadd [#allocation9], 4294965248  ;;  %v695_v0 = vmov 0.0|0.0   ;;  %vm696_vm0 = vmmov 0   ;;  %v697_v1 = vmov 0.0   ;;  %v83_v2 = vld [vmem:[#allocation5] sm:$0xff] }
  0x4a   :  { %503 = vmatprep.subr.bf16.mxu0 %v695_v0  ;;  %430 = vmatprep.mubr.msk.f32.mxu0 %vm696_vm0, %v697_v1  ;;  %v84_v3 = vld [vmem:[#allocation5 + $0x8] sm:$0xff]  ;;  %v85_v4 = vld [vmem:[#allocation5 + $0x10] sm:$0xff]  ;;  %v86_v6 = vld [vmem:[#allocation5 + $0x18] sm:$0xff]  ;;  %vm94_vm1 = vcmask 261120   ;;  %s698_s9 = smov [#allocation10]  }
  0x4b   :  { %509 = vmatprep.subr.bf16.mxu1 %v695_v0  ;;  %465 = vmatprep.mubr.msk.f32.mxu1 %vm696_vm0, %v697_v1  ;;  %v504_v5 = vpack.c.bf16 %v84_v3, %v83_v2  ;;  %v169_v7 = vld [vmem:[#allocation7] sm:$0xff]  ;;  %v170_v8 = vld [vmem:[#allocation7 + $0x8] sm:$0xff]  ;;  %v171_v9 = vld [vmem:[#allocation7 + $0x10] sm:$0xff]  ;;  %v507_v11 = vpack.c.bf16 %v86_v6, %v85_v4  ;;  %s364_s10 = sshll.u32 %s698_s9, 4  ;;  %s365_s10 = int_to_ptr.vmem [resolvable:$true] %s364_s10 }
  0x4c   :  { %v172_v10 = vld [vmem:[#allocation7 + $0x18] sm:$0xff]  ;;  %v510_v12 = vpack.c.bf16 %v170_v8, %v169_v7  ;;  %v173_v14 = vld [vmem:[#allocation7 + $0x20] sm:$0xff]  ;;  %v174_v15 = vld [vmem:[#allocation7 + $0x28] sm:$0xff]  ;;  %s659_s11 = scalar_lea.vmem %s365_s10, 128  ;;  %p664_p5 = scmp.lt.s32.totalorder %s365_s10, %s365_s10 }
  0x4d   :  { %505 = vmatpush3.bf16.msra.mxu0 %v504_v5  ;;  %v513_v13 = vpack.c.bf16 %v172_v10, %v171_v9  ;;  %v82_v16 = vld [vmem:[#allocation2] sm:$0xff]  ;;  %v516_v17 = vpack.c.bf16 %v174_v15, %v173_v14  ;;  %v175_v18 = vld [vmem:[#allocation7 + $0x30] sm:$0xff]  ;;  %v177_v21 = vld [vmem:[#allocation7 + $0x40] sm:$0xff]  ;;  %p660_p4 = scmp.ne.s32.totalorder %s365_s10, %s659_s11  ;;  %p665_p6 = scmp.lt.s32.totalorder %s659_s11, %s659_s11 }
  0x4e   :  { %506 = vmatprep.subr.bf16.mxu0 %v695_v0  ;;  %511 = vmatpush3.bf16.msra.mxu1 %v510_v12  ;;  %v176_v19 = vld [vmem:[#allocation7 + $0x38] sm:$0xff]  ;;  %v178_v22 = vld [vmem:[#allocation7 + $0x48] sm:$0xff]  ;;  %v179_v24 = vld [vmem:[#allocation7 + $0x50] sm:$0xff] }
  0x4f   :  { %512 = vmatprep.subr.bf16.mxu1 %v695_v0  ;;  %v519_v20 = vpack.c.bf16 %v176_v19, %v175_v18  ;;  %v522_v23 = vpack.c.bf16 %v178_v22, %v177_v21  ;;  %v180_v25 = vld [vmem:[#allocation7 + $0x58] sm:$0xff]  ;;  %v181_v27 = vld [vmem:[#allocation7 + $0x60] sm:$0xff]  ;;  %v182_v28 = vld [vmem:[#allocation7 + $0x68] sm:$0xff]  ;;  %p666_p7 = por %p665_p6, %p664_p5 }
  0x50   :  { %v525_v26 = vpack.c.bf16 %v180_v25, %v179_v24  ;;  %v528_v29 = vpack.c.bf16 %v182_v28, %v181_v27  ;;  %v183_v30 = vld [vmem:[#allocation7 + $0x70] sm:$0xff]  ;;  %v184_v31 = vld [vmem:[#allocation7 + $0x78] sm:$0xff]  ;;  %v264_v33 = vld [vmem:[#allocation8] sm:$0xff] }
  0x51   :  { %508 = vmatpush3.bf16.msra.mxu0 %v507_v11  ;;  %v531_v32 = vpack.c.bf16 %v184_v31, %v183_v30  ;;  %v265_v34 = vld [vmem:[#allocation8 + $0x8] sm:$0xff]  ;;  %v266_v35 = vld [vmem:[#allocation8 + $0x10] sm:$0xff]  ;;  %v267_v37 = vld [vmem:[#allocation8 + $0x18] sm:$0xff]  ;;  %p667_p8 = pnand %p666_p7, %p660_p4 }
  0x52   :  { %533 = vmatprep.subr.bf16.mxu0 %v695_v0  ;;  %514 = vmatpush3.bf16.msra.mxu1 %v513_v13  ;;  %v534_v36 = vpack.c.bf16 %v265_v34, %v264_v33  ;;  %v537_v38 = vpack.c.bf16 %v267_v37, %v266_v35  ;;  %v268_v39 = vld [vmem:[#allocation8 + $0x20] sm:$0xff]  ;;  %v269_v40 = vld [vmem:[#allocation8 + $0x28] sm:$0xff]  ;;  %v270_v42 = vld [vmem:[#allocation8 + $0x30] sm:$0xff] }
  0x53   :  { %515 = vmatprep.subr.bf16.mxu1 %v695_v0  ;;  %v540_v41 = vpack.c.bf16 %v269_v40, %v268_v39  ;;  %v271_v43 = vld [vmem:[#allocation8 + $0x38] sm:$0xff]  ;;  %v272_v45 = vld [vmem:[#allocation8 + $0x40] sm:$0xff]  ;;  %v273_v46 = vld [vmem:[#allocation8 + $0x48] sm:$0xff] }
  0x54   :  { %431 = vmatmul.mubr.msk.f32.vlgmr.msra.gmra.mrb[0].mxu0 %vm94_vm1, %v82_v16  ;;  %v543_v44 = vpack.c.bf16 %v271_v43, %v270_v42  ;;  %v546_v47 = vpack.c.bf16 %v273_v46, %v272_v45  ;;  %v379_v48 = vld [vmem:[%s848_s2] ss:$0 sm:$0xff]  ;;  %v274_v53 = vld [vmem:[#allocation8 + $0x50] sm:$0xff]  ;;  %v275_v54 = vld [vmem:[#allocation8 + $0x58] sm:$0xff] }
  0x55   :  { %500 = vmatprep.mubr.msk.f32.mxu0 %vm696_vm0, %v697_v1  ;;  %535 = vmatpush3.bf16.msra.mxu0 %v534_v36  ;;  %v549_v55 = vpack.c.bf16 %v275_v54, %v274_v53  ;;  %v276_v56 = vld [vmem:[#allocation8 + $0x60] sm:$0xff]  ;;  %v277_v57 = vld [vmem:[#allocation8 + $0x68] sm:$0xff]  ;;  %v278_v59 = vld [vmem:[#allocation8 + $0x70] sm:$0xff] }
  0x56   :  { %517 = vmatpush3.bf16.msra.mxu1 %v516_v17  ;;  %536 = vmatprep.subr.bf16.mxu0 %v695_v0  ;;  %v552_v58 = vpack.c.bf16 %v277_v57, %v276_v56  ;;  %v279_v60 = vld [vmem:[#allocation8 + $0x78] sm:$0xff]  ;;  %v381_v62 = vld [vmem:[%s850_s4] ss:$0 sm:$0xff] }
  0x57   :  { %518 = vmatprep.subr.bf16.mxu1 %v695_v0  ;;  %v555_v61 = vpack.c.bf16 %v279_v60, %v278_v59 }
  0x59   :  { %538 = vmatpush3.bf16.msra.mxu0 %v537_v38 }
  0x5a   :  { %520 = vmatpush3.bf16.msra.mxu1 %v519_v20  ;;  %539 = vmatprep.subr.bf16.mxu0 %v695_v0 }
  0x5b   :  { %521 = vmatprep.subr.bf16.mxu1 %v695_v0 }
  0x5d   :  { %541 = vmatpush3.bf16.msra.mxu0 %v540_v41 }
  0x5e   :  { %523 = vmatpush3.bf16.msra.mxu1 %v522_v23  ;;  %542 = vmatprep.subr.bf16.mxu0 %v695_v0 }
  0x5f   :  { %524 = vmatprep.subr.bf16.mxu1 %v695_v0 }
  0x61   :  { %544 = vmatpush3.bf16.msra.mxu0 %v543_v44 }
  0x62   :  { %526 = vmatpush3.bf16.msra.mxu1 %v525_v26  ;;  %545 = vmatprep.subr.bf16.mxu0 %v695_v0 }
  0x63   :  { %527 = vmatprep.subr.bf16.mxu1 %v695_v0 }
  0x65   :  { %547 = vmatpush3.bf16.msra.mxu0 %v546_v47 }
  0x66   :  { %529 = vmatpush3.bf16.msra.mxu1 %v528_v29  ;;  %548 = vmatprep.subr.bf16.mxu0 %v695_v0 }
  0x67   :  { %530 = vmatprep.subr.bf16.mxu1 %v695_v0 }
  0x69   :  { %550 = vmatpush3.bf16.msra.mxu0 %v549_v55 }
  0x6a   :  { %532 = vmatpush3.bf16.msra.mxu1 %v531_v32  ;;  %551 = vmatprep.subr.bf16.mxu0 %v695_v0 }
  0x6d   :  { %553 = vmatpush3.bf16.msra.mxu0 %v552_v58 }
  0x6e   :  { %554 = vmatprep.subr.bf16.mxu0 %v695_v0 }
  0x71   :  { %556 = vmatpush3.bf16.msra.mxu0 %v555_v61 }
 0x127   :  { %v164_v49 = vpop.f32.mrb[0].mxu0 }
 0x128   :  { %v165_v50 = vadd.f32 %v379_v48, %v164_v49  ;;  %v432_v51 = vpop.f32.mrb[1].mxu0 }
 0x12a   :  { %567 = vtanh.f32 %v165_v50 }
 0x134   :  { %v568_v52 = vpop.eup %567 }
 0x135   :  { %466 = vmatmul.mubr.f32.vlgmr.msra.gmra.mrb[0].mxu1 %v568_v52 }
 0x208   :  { %v258_v63 = vpop.f32.mrb[0].mxu1 }
 0x209   :  { %v259_v1 = vadd.f32 %v381_v62, %v258_v63  ;;  %v467_v2 = vpop.f32.mrb[1].mxu1 }
 0x20b   :  { %569 = vtanh.f32 %v259_v1 }
 0x215   :  { %v570_v3 = vpop.eup %569 }
 0x216   :  { %263 = vst [vmem:[#allocation10] sm:$0xff] %v570_v3  ;;  %501 = vmatmul.mubr.f32.vlgmr.msra.gmra.mrb[2].mxu0 %v570_v3 }
 0x217   :  { %670 = shalt.err (!%p667_p8)
}
 0x218   :  { %s671_s4 = scalar_lea.hbm %s853_s7, 128 }
 0x219   :  { %p672_p9 = scmp.ne.s32.totalorder %s853_s7, %s671_s4  ;;  %p675_p10 = scmp.lt.u32.totalorder %s671_s4, %s853_s7 }
 0x21b   :  { %p677_p11 = pnand %p675_p10, %p672_p9 }
 0x21d   :  { %680 = shalt.err (!%p677_p11)
}
 0x21e   :  { %367 = dma.vmem_to_hbm [thread:$0]  %s365_s10, 128, %s853_s7, [#allocation4]   ;;  %v382_v0 = vld [vmem:[%s852_s6] ss:$0 sm:$0xff] }
 0x2e9   :  { %v353_v4 = vpop.f32.mrb[2].mxu0 }
 0x2ea   :  { %v354_v5 = vadd.f32 %v382_v0, %v353_v4  ;;  %v502_v6 = vpop.f32.mrb[3].mxu0 }
 0x2ec   :  { %357 = vst [vmem:[%s854_s8] sm:$0xff] %v354_v5 }
 0x2ed   :  { %687 = dma.done.wait [#allocation4], 128  }
 0x2ee   :  { %688 = vsyncadd [#allocation4], 4294967168 }
 0x2ef   :  { %375 = vsyncpa [#allocation3], 1 }
 0x2f0   :  { %376 = vsyncpa [#allocation6], 1 }
 0x2f1   :  { %377 = vsyncpa [#allocation9], 1 }
 0x2f2   :  { %378 = vsyncpa [#allocation4], 1 }

</bundles_post_ra>
